<compile_context>
chip_gen: v7x
topology: tpu7x:2x2x1
jax: 0.10.0
libtpu: 0.0.40
codegen_flags: <defaults>
</compile_context>

<pallas_src>
import functools
import math

import jax
import jax.numpy as jnp
from jax.experimental import pallas as pl
from jax.experimental.pallas import tpu as pltpu

ALPHA = 0.2                       # LeakyReLU negative slope of the module

_VMEM_LIMIT_CACHE = None


def _vmem_limit():
    """Generation-aware VMEM budget: 48 MiB on v7x (64 MiB), 96 MiB otherwise."""
    global _VMEM_LIMIT_CACHE
    if _VMEM_LIMIT_CACHE is None:
        limit = 48 * 1024 * 1024
        try:
            cap = getattr(pltpu.get_tpu_info(), "vmem_capacity_bytes", None)
            if cap is not None and int(cap) >= 100 * 1024 * 1024:
                limit = 96 * 1024 * 1024
        except Exception:
            pass
        _VMEM_LIMIT_CACHE = limit
    return _VMEM_LIMIT_CACHE


def _round_up(x, m):
    return ((x + m - 1) // m) * m


# ----------------------------------------------------------------------------
# Pallas tiled matmul: bf16 MXU operands, f32 accumulation, full-K resident,
# fused LeakyReLU epilogue, bf16 or f32 output.
# ----------------------------------------------------------------------------
def _mm_kernel(a_ref, b_ref, o_ref, *, act):
    r = jnp.dot(a_ref[...], b_ref[...], preferred_element_type=jnp.float32)
    if act:
        r = jnp.where(r > 0, r, ALPHA * r)
    o_ref[...] = r.astype(o_ref.dtype)


def pallas_matmul(a, b, act=False, out_dtype=jnp.float32):
    """out = a @ b. `b` is a pre-padded/pre-cast bf16 weight (K x Np, Np%128==0)."""
    M, K = a.shape
    Kb, Np = b.shape
    assert K == Kb, (K, Kb)
    assert Np % 128 == 0
    assert K <= 4096  # full-K resident; this network never exceeds 2048

    a = a.astype(jnp.bfloat16)            # no-op when activations are already bf16

    Mp16 = _round_up(M, 16)               # bf16 packs 16 rows per vreg
    tm = min(Mp16, 512)
    Mp = _round_up(M, tm)
    tn = Np if Np <= 2048 else 2048       # full-N resident everywhere in this net
    nm, nj = Mp // tm, Np // tn

    if Mp != M:
        a = jnp.pad(a, ((0, Mp - M), (0, 0)))

    out = pl.pallas_call(
        functools.partial(_mm_kernel, act=act),
        out_shape=jax.ShapeDtypeStruct((Mp, Np), out_dtype),
        grid_spec=pltpu.PrefetchScalarGridSpec(
            num_scalar_prefetch=0,
            grid=(nm, nj),
            in_specs=[
                pl.BlockSpec((tm, K), lambda i, j: (i, 0)),
                pl.BlockSpec((K, tn), lambda i, j: (0, j)),
            ],
            out_specs=pl.BlockSpec((tm, tn), lambda i, j: (i, j)),
        ),
        compiler_params=pltpu.CompilerParams(
            dimension_semantics=("parallel", "parallel"),
            vmem_limit_bytes=_vmem_limit()),
    )(a, b)
    return out[:M] if Mp != M else out


# ----------------------------------------------------------------------------
# Fused GCN head kernel: Linear -> LeakyReLU -> gc1 -> adj -> LeakyReLU ->
# gc2 -> adj -> LeakyReLU -> classifier -> sigmoid, one pallas_call.
# ----------------------------------------------------------------------------
def _head_kernel(feat_ref, adj_ref, lw_ref, lb_ref, g1_ref, g2_ref,
                 cw_ref, cb_ref, o_ref):
    # Linear(2048 -> 512) + bias + LeakyReLU
    f = jnp.dot(feat_ref[...], lw_ref[...], preferred_element_type=jnp.float32)
    f = f + lb_ref[...]
    f = jnp.where(f > 0, f, ALPHA * f)

    adj = adj_ref[...]                                       # bf16 adjacency
    # GCN layer 1: leaky(adj @ (f @ W1))
    s = jnp.dot(f.astype(jnp.bfloat16), g1_ref[...],
                preferred_element_type=jnp.float32)
    g = jnp.dot(adj, s.astype(jnp.bfloat16), preferred_element_type=jnp.float32)
    g = jnp.where(g > 0, g, ALPHA * g)
    # GCN layer 2: leaky(adj @ (g @ W2))
    s = jnp.dot(g.astype(jnp.bfloat16), g2_ref[...],
                preferred_element_type=jnp.float32)
    g = jnp.dot(adj, s.astype(jnp.bfloat16), preferred_element_type=jnp.float32)
    g = jnp.where(g > 0, g, ALPHA * g)
    # classifier + sigmoid
    logits = jnp.dot(g.astype(jnp.bfloat16), cw_ref[...],
                     preferred_element_type=jnp.float32) + cb_ref[...]
    o_ref[...] = 1.0 / (1.0 + jnp.exp(-logits))


def gcn_head(p, feat, adj, num_classes):
    # TODO(synk): on v7x the single-program head uses one TensorCore; split the
    # gc2/classifier N dim 2-way if the batch ever grows large enough to matter.
    B = feat.shape[0]
    Bp = _round_up(B, 16)
    Cp = p["classi_w"].shape[1]
    feat_p = jnp.pad(feat.astype(jnp.bfloat16), ((0, Bp - B), (0, 0)))
    adj_p = jnp.pad(adj, ((0, Bp - B), (0, Bp - B))).astype(jnp.bfloat16)

    args = (feat_p, adj_p, p["lin_w"], p["lin_b"],
            p["gc1_w"], p["gc2_w"], p["classi_w"], p["classi_b"])
    in_specs = [pl.BlockSpec(a.shape, lambda i: (0, 0)) for a in args]

    out = pl.pallas_call(
        _head_kernel,
        out_shape=jax.ShapeDtypeStruct((Bp, Cp), jnp.float32),
        grid_spec=pltpu.PrefetchScalarGridSpec(
            num_scalar_prefetch=0,
            grid=(1,),
            in_specs=in_specs,
            out_specs=pl.BlockSpec((Bp, Cp), lambda i: (0, 0)),
        ),
        compiler_params=pltpu.CompilerParams(
            dimension_semantics=("arbitrary",),
            vmem_limit_bytes=_vmem_limit()),
    )(*args)
    return out[:B, :num_classes]


# ----------------------------------------------------------------------------
# Channels-last layer helpers (glue in plain JAX, matmuls through Pallas)
# ----------------------------------------------------------------------------
def leaky(x):
    return jnp.where(x > 0, x, ALPHA * x)


def conv1x1_cl(x, wmat, cout, stride=1, act=False, out_dtype=jnp.bfloat16):
    """1x1 Conv1d, channels-last. x: (B, L, Cin), wmat: (Cin_pad, Cout_pad) bf16."""
    if stride > 1:
        x = x[:, ::stride, :]
    B, L, Cin = x.shape
    out = pallas_matmul(x.reshape(B * L, Cin), wmat, act=act, out_dtype=out_dtype)
    if out.shape[1] != cout:
        out = out[:, :cout]
    return out.reshape(B, L, cout)


def convk_cl(x, wmat, cout, ksize, stride=1, padding=0, act=False,
             out_dtype=jnp.bfloat16):
    """k-tap Conv1d via im2col, channels-last. wmat: (K_pad, Cout_pad) bf16."""
    B, L, Cin = x.shape
    Lout = (L + 2 * padding - ksize) // stride + 1
    xp = jnp.pad(x, ((0, 0), (padding, padding), (0, 0)))
    cols = [xp[:, k: k + stride * (Lout - 1) + 1: stride, :]
            for k in range(ksize)]
    patches = jnp.stack(cols, axis=2).reshape(B * Lout, ksize * Cin)
    kw = wmat.shape[0]
    if kw != ksize * Cin:                       # only the 7-tap stem (7 -> 16)
        patches = jnp.pad(patches, ((0, 0), (0, kw - ksize * Cin)))
    out = pallas_matmul(patches, wmat, act=act, out_dtype=out_dtype)
    if out.shape[1] != cout:
        out = out[:, :cout]
    return out.reshape(B, Lout, cout)


def batchnorm_cl(x, weight, bias, eps=1e-5):
    """BatchNorm1d (training-mode batch statistics), channels-last, single pass."""
    # TODO(synk): no running-mean/var (eval mode) path, matching training-mode
    # batch statistics only.
    m = x.mean(axis=(0, 1), keepdims=True)
    m2 = (x * x).mean(axis=(0, 1), keepdims=True)
    var = jnp.maximum(m2 - m * m, 0.0)
    return (x - m) * jax.lax.rsqrt(var + eps) * weight[None, None, :] \
        + bias[None, None, :]


def maxpool1d_3s2p1_cl(x):
    """MaxPool1d(kernel_size=3, stride=2, padding=1), channels-last."""
    B, L, C = x.shape
    Lout = (L + 2 - 3) // 2 + 1
    xp = jnp.pad(x, ((0, 0), (1, 1), (0, 0)), constant_values=-jnp.inf)
    cols = [xp[:, k: k + 2 * (Lout - 1) + 1: 2, :] for k in range(3)]
    return jnp.max(jnp.stack(cols, axis=0), axis=0)


def bottleneck(x, p):
    """x: (B, L, Cin) bf16.  Matches the spec Bottleneck (only bn3, no bn1/bn2)."""
    s = p["stride"]
    out = conv1x1_cl(x, p["conv1_w"], p["c1"], act=True, out_dtype=jnp.bfloat16)
    out = convk_cl(out, p["conv2_w"], p["c2"], 3, stride=s, padding=1,
                   act=True, out_dtype=jnp.bfloat16)
    out = conv1x1_cl(out, p["conv3_w"], p["c3"], act=False, out_dtype=jnp.float32)
    out = batchnorm_cl(out, p["bn3_w"], p["bn3_b"])
    if "down_w" in p:
        identity = conv1x1_cl(x, p["down_w"], p["c3"], stride=s,
                              act=False, out_dtype=jnp.float32)
    else:
        identity = x
    # BN-affine + residual + LeakyReLU + bf16 cast stay in one XLA elementwise
    # fusion; the batch-stat reduction cannot live in the matmul epilogue.
    return leaky(out + identity.astype(jnp.float32)).astype(jnp.bfloat16)


def backbone(x, p):
    x = x.transpose(0, 2, 1)                  # NCL -> NLC once at the entry
    x = convk_cl(x, p["stem_w"], 64, 7, stride=2, padding=3,
                 act=False, out_dtype=jnp.float32)
    x = batchnorm_cl(x, p["bn1_w"], p["bn1_b"])
    x = leaky(x)
    x = maxpool1d_3s2p1_cl(x).astype(jnp.bfloat16)
    for layer in p["layers"]:
        for blk in layer:
            x = bottleneck(x, blk)
    return x                                   # (B, L/32, 2048) channels-last bf16


def gen_adj(label):
    # TODO(synk): gen_A / gen_adj_ are not defined in the provided source; use
    # label co-occurrence (+self-loops) with symmetric D^-1/2 A D^-1/2 norm.
    A = (label @ label.T > 0).astype(jnp.float32)
    A = jnp.minimum(A + jnp.eye(label.shape[0], dtype=jnp.float32), 1.0)
    d = jax.lax.rsqrt(A.sum(axis=1))
    return A * d[:, None] * d[None, :]


def resnet_gcn_forward(params, x, label):
    feat = backbone(x, params)                        # (B, L', 2048) bf16
    feat = feat.astype(jnp.float32).mean(axis=1)      # AdaptiveAvgPool1d(1) + view
    adj = gen_adj(label)                              # (B, B)
    return gcn_head(params, feat, adj, params["num_classes"])


# ----------------------------------------------------------------------------
# Deterministic parameter initialization. Weights are laid out, padded
# (K -> mult of 16, N -> mult of 128) and cast to bf16 ONCE here.
# ----------------------------------------------------------------------------
def _kaiming_conv(key, cout, cin, k):
    fan_out = cout * k
    gain = math.sqrt(2.0)                  # kaiming_normal_(a=0, leaky_relu)
    std = gain / math.sqrt(fan_out)
    return std * jax.random.normal(key, (cout, cin, k), jnp.float32)


def _conv_wmat(key, cout, cin, k):
    w = _kaiming_conv(key, cout, cin, k)               # PyTorch (Cout, Cin, K)
    m = w.transpose(2, 1, 0).reshape(k * cin, cout)    # rows ordered (k, cin)
    rows = _round_up(k * cin, 16)
    cols = _round_up(cout, 128)
    m = jnp.pad(m, ((0, rows - k * cin), (0, cols - cout)))
    return m.astype(jnp.bfloat16)


def _linear_init(key, in_f, out_f):
    k1, k2 = jax.random.split(key)
    bound = 1.0 / math.sqrt(in_f)
    w = jax.random.uniform(k1, (out_f, in_f), jnp.float32, -bound, bound)
    b = jax.random.uniform(k2, (out_f,), jnp.float32, -bound, bound)
    return w, b


def _gcn_init(key, in_f, out_f):
    stdv = 1.0 / math.sqrt(out_f)
    return jax.random.uniform(key, (in_f, out_f), jnp.float32, -stdv, stdv)


def init_params(key, num_classes=10, in_channel=512):
    keys = iter(jax.random.split(key, 256))
    p = {
        "num_classes": num_classes,
        "stem_w": _conv_wmat(next(keys), 64, 1, 7),      # (16, 128) padded
        "bn1_w": jnp.ones((64,), jnp.float32),
        "bn1_b": jnp.zeros((64,), jnp.float32),
    }
    inplanes = 64
    cfg = [(64, 3, 1), (128, 4, 2), (256, 6, 2), (512, 3, 2)]  # Bottleneck [3,4,6,3]
    layers = []
    for planes, blocks, stride in cfg:
        blks = []
        for bi in range(blocks):
            s = stride if bi == 0 else 1
            blk = {
                "conv1_w": _conv_wmat(next(keys), planes, inplanes, 1),
                "conv2_w": _conv_wmat(next(keys), planes, planes, 3),
                "conv3_w": _conv_wmat(next(keys), planes * 4, planes, 1),
                "bn3_w": jnp.ones((planes * 4,), jnp.float32),
                "bn3_b": jnp.zeros((planes * 4,), jnp.float32),
                "stride": s,
                "c1": planes, "c2": planes, "c3": planes * 4,
            }
            if bi == 0 and (s != 1 or inplanes != planes * 4):
                blk["down_w"] = _conv_wmat(next(keys), planes * 4, inplanes, 1)
            blks.append(blk)
            inplanes = planes * 4
        layers.append(blks)
    p["layers"] = layers

    # Head weights: pre-transposed / pre-padded / pre-cast once here.
    lw, lb = _linear_init(next(keys), 2048, 512)            # Linear(2048, 512)
    p["lin_w"] = lw.T.astype(jnp.bfloat16)                  # (2048, 512)
    p["lin_b"] = lb[None, :]                                # (1, 512) f32
    p["gc1_w"] = _gcn_init(next(keys), in_channel, 1024).astype(jnp.bfloat16)
    p["gc2_w"] = _gcn_init(next(keys), 1024, 2048).astype(jnp.bfloat16)
    cw, cb = _linear_init(next(keys), 2048, num_classes)    # Linear(2048, C)
    Cp = _round_up(num_classes, 128)
    p["classi_w"] = jnp.pad(cw.T, ((0, 0), (0, Cp - num_classes))
                            ).astype(jnp.bfloat16)          # (2048, Cp)
    p["classi_b"] = jnp.pad(cb[None, :], ((0, 0), (0, Cp - num_classes)))
    return p


# ----------------------------------------------------------------------------
if __name__ == "__main__":
    key = jax.random.PRNGKey(0)
    kx, kl, kp = jax.random.split(key, 3)

    B, L, num_classes = 2, 64, 10
    x = jax.random.normal(kx, (B, 1, L), jnp.float32)            # (B, 1, L) NCL
    label = (jax.random.uniform(kl, (B, num_classes)) > 0.5).astype(jnp.float32)

    params = init_params(kp, num_classes=num_classes)

    out = resnet_gcn_forward(params, x, label)
    out = jax.block_until_ready(out)
    assert out.shape == (B, num_classes)
    assert bool(jnp.all(jnp.isfinite(out)))
    assert bool(jnp.all((out >= 0) & (out <= 1)))
    print("KERNEL_OK")
</pallas_src>

<mosaic_0001>
module attributes {stable_mosaic.version = 11 : i64} {
  func.func @_mm_kernel(%arg0: i32, %arg1: i32, %arg2: memref<64x16xbf16, #tpu.memory_space<vmem>>, %arg3: memref<16x128xbf16, #tpu.memory_space<vmem>>, %arg4: memref<64x128xf32, #tpu.memory_space<vmem>>) attributes {dimension_semantics = [#tpu.dimension_semantics<parallel>, #tpu.dimension_semantics<parallel>], iteration_bounds = array<i64: 1, 1>, scalar_prefetch = 0 : i64, scratch_operands = 0 : i64, tpu.core_type = #tpu.core_type<tc>, window_params = [{transform_indices = @transform_0, window_bounds = array<i64: 64, 16>}, {transform_indices = @transform_1, window_bounds = array<i64: 16, 128>}, {transform_indices = @transform_2, window_bounds = array<i64: 64, 128>}]} {
    %c0 = arith.constant 0 : index
    %c0_0 = arith.constant 0 : index
    %0 = vector.load %arg2[%c0, %c0_0] : memref<64x16xbf16, #tpu.memory_space<vmem>>, vector<64x16xbf16>
    %c0_1 = arith.constant 0 : index
    %c0_2 = arith.constant 0 : index
    %1 = vector.load %arg3[%c0_1, %c0_2] : memref<16x128xbf16, #tpu.memory_space<vmem>>, vector<16x128xbf16>
    %cst = arith.constant dense<0.000000e+00> : vector<64x128xf32>
    %2 = tpu.matmul %0, %1, %cst {dimension_numbers = #tpu.dot_dimension_numbers<[1], [0], [0], [1], [0, 0, 1, 1], [], []>} : vector<64x16xbf16>, vector<16x128xbf16>, vector<64x128xf32> -> vector<64x128xf32>
    %c0_3 = arith.constant 0 : index
    %c0_4 = arith.constant 0 : index
    %3 = vector.load %arg4[%c0_3, %c0_4] : memref<64x128xf32, #tpu.memory_space<vmem>>, vector<64x128xf32>
    tpu.vector_store %arg4[%c0_3, %c0_4], %2 {strides = array<i32>} : memref<64x128xf32, #tpu.memory_space<vmem>>, vector<64x128xf32>,
    return
  }
  func.func @transform_0(%arg0: i32, %arg1: i32) -> (i32, i32) {
    %c0_i32 = arith.constant 0 : i32
    %c0_i32_0 = arith.constant 0 : i32
    return %arg0, %c0_i32 : i32, i32
  }
  func.func @transform_1(%arg0: i32, %arg1: i32) -> (i32, i32) {
    %c0_i32 = arith.constant 0 : i32
    %c0_i32_0 = arith.constant 0 : i32
    return %c0_i32, %arg1 : i32, i32
  }
  func.func @transform_2(%arg0: i32, %arg1: i32) -> (i32, i32) {
    %c0_i32 = arith.constant 0 : i32
    return %arg0, %arg1 : i32, i32
  }
}

</mosaic_0001>

<bundles_post_ra>
// kernel: tpu_custom_call.1
= control target key start
LH: loop header
LB: loop body
LE: loop exit
PB: predicated region body
PF: predicated region fallthrough
CT: control target
= control target key end

     0   :  { %vm49_vm0 = vcmask 130048   ;;  %s254_s0 = inlined_call_operand.vmem [shape: bf16[64,16], index: 0, kind: input, shape index: {}]   ;;  %s255_s1 = inlined_call_operand.vmem [shape: bf16[16,128], index: 1, kind: input, shape index: {}]   ;;  %s256_s2 = inlined_call_operand.hbm [shape: f32[64,128], index: 2, kind: output, shape index: {}]  }
   0x1   :  { %v180_v0 = vld [vmem:[%s255_s1] sm:$0xff]   ;;  %v182_v2 = vld [vmem:[%s254_s0 + $0x10] sm:$0xff]   ;;  %v183_v3 = vld [vmem:[%s254_s0 + $0x8] sm:$0xff]  }
   0x2   :  { %v181_v1 = vld [vmem:[%s254_s0] sm:$0xff]   ;;  %165 = vmatprep.subr.bf16.mxu0 %v180_v0  ;;  %175 = vmatprep.subr.bf16.mxu1 %v180_v0  ;;  %v184_v4 = vld [vmem:[%s254_s0 + $0x18] sm:$0xff]  }
   0x3   :  { %166 = vmatpush3.bf16.msra.mxu0 %v180_v0  ;;  %176 = vmatpush3.bf16.msra.mxu1 %v180_v0 }
   0x4   :  { %167 = vmatprep.mubr.msk.bf16.mxu0 %vm49_vm0, %v181_v1  ;;  %171 = vmatprep.mubr.msk.bf16.mxu1 %vm49_vm0, %v182_v2 }
   0x5   :  { %7 = vsyncpa [#allocation3], 0  ;;  %s209_s18 = smov [#allocation2]  }
   0x6   :  { %168 = vmatmul.mubr.msk.bf16.vlgmr.msra.gmra.mrb[0].mxu0 %vm49_vm0, %v183_v3  ;;  %172 = vmatmul.mubr.msk.bf16.vlgmr.msra.gmra.mrb[0].mxu1 %vm49_vm0, %v184_v4  ;;  %s140_s19 = sshll.u32 %s209_s18, 4  ;;  %s141_s19 = int_to_ptr.vmem [resolvable:$true] %s140_s19 }
   0x7   :  { %s185_s0 = scalar_lea.vmem %s141_s19, 1024  ;;  %p190_p1 = scmp.lt.s32.totalorder %s141_s19, %s141_s19 }
   0x8   :  { %p186_p0 = scmp.ne.s32.totalorder %s141_s19, %s185_s0  ;;  %p191_p2 = scmp.lt.s32.totalorder %s185_s0, %s185_s0 }
   0xa   :  { %p192_p3 = por %p191_p2, %p190_p1 }
   0xc   :  { %p193_p4 = pnand %p192_p3, %p186_p0 }
  0xd9   :  { %v169_v5 = vpop.f32.mrb[0].mxu0  ;;  %v173_v6 = vpop.f32.mrb[0].mxu1 }
  0xda   :  { %129 = vst [vmem:[#allocation2 + $0x10] sm:$0xff] %v169_v5  ;;  %133 = vst [vmem:[#allocation2 + $0x30] sm:$0xff] %v173_v6  ;;  %v96_v7 = vpop.f32.mrb[1].mxu0  ;;  %v112_v8 = vpop.f32.mrb[1].mxu1 }
  0xdb   :  { %127 = vst [vmem:[#allocation2] sm:$0xff] %v96_v7  ;;  %131 = vst [vmem:[#allocation2 + $0x20] sm:$0xff] %v112_v8  ;;  %v170_v9 = vpop.f32.mrb[2].mxu0  ;;  %v174_v10 = vpop.f32.mrb[2].mxu1 }
  0xdc   :  { %130 = vst [vmem:[#allocation2 + $0x18] sm:$0xff] %v170_v9  ;;  %134 = vst [vmem:[#allocation2 + $0x38] sm:$0xff] %v174_v10  ;;  %v99_v11 = vpop.f32.mrb[3].mxu0  ;;  %v115_v12 = vpop.f32.mrb[3].mxu1 }
  0xdd   :  { %128 = vst [vmem:[#allocation2 + $0x8] sm:$0xff] %v99_v11  ;;  %132 = vst [vmem:[#allocation2 + $0x28] sm:$0xff] %v115_v12 }
  0xde   :  { %196 = shalt.err (!%p193_p4)
}
  0xdf   :  { %s197_s22 = scalar_lea.hbm %s256_s2, 1024 }
  0xe0   :  { %p198_p5 = scmp.ne.s32.totalorder %s256_s2, %s197_s22  ;;  %p201_p6 = scmp.lt.u32.totalorder %s197_s22, %s256_s2 }
  0xe2   :  { %p203_p7 = pnand %p201_p6, %p198_p5 }
  0xe4   :  { %206 = shalt.err (!%p203_p7)
}
  0xe5   :  { %s210_s27 = smov 128   ;;  %s211_s28 = smov 8  }
  0xe6   :  { %146 = dma.vmem_to_hbm [thread:$0]  %s141_s19, 1024, %s256_s2, [#allocation3], %s210_s27, %s210_s27, %s211_s28  }
  0xe7   :  { %207 = dma.done.wait [#allocation3], 1024  }
  0xe8   :  { %208 = vsyncadd [#allocation3], 4294966272 }
  0xe9   :  { %150 = vsyncpa [#allocation3], 1 }

</bundles_post_ra>
